<compile_context>
chip_gen: v5e
topology: v5e:2x2
jax: 0.10.0
libtpu: 0.0.40
codegen_flags: <defaults>
</compile_context>

<pallas_src>
import jax
import jax.numpy as jnp
from jax.experimental import pallas as pl
from jax.experimental.pallas import tpu as pltpu

EPS = 1e-5  # nn.LayerNorm default


def _cnn_layernorm_kernel(x_ref, gamma_ref, beta_ref, o_ref):
    # x_ref block: (nBC, F, tT); gamma/beta: (F, 1)
    x = x_ref[...].astype(jnp.float32)                           # load once
    mean = jnp.mean(x, axis=1, keepdims=True)                    # (nBC, 1, tT)
    mean_sq = jnp.mean(x * x, axis=1, keepdims=True)             # (nBC, 1, tT)
    var = jnp.maximum(mean_sq - mean * mean, 0.0)                # biased (PyTorch LN)
    inv = jax.lax.rsqrt(var + EPS)                               # (nBC, 1, tT)
    # (F,1) params broadcast lazily against (nBC, F, tT); no explicit broadcast_to.
    y = (x - mean) * inv * gamma_ref[...] + beta_ref[...]
    o_ref[...] = y.astype(o_ref.dtype)


def _round_up(v, m):
    return ((v + m - 1) // m) * m


def cnn_layer_norm(x, gamma, beta, *, block_bytes_target=4 << 20):
    """x: (B, C, F, T); gamma, beta: (F,). Returns same shape/dtype as x."""
    B, C, F, T = x.shape
    BC = B * C
    itemsize = jnp.dtype(x.dtype).itemsize

    # --- time tile: maximize contiguity first -------------------------------
    if T <= 128 or F * T * itemsize <= block_bytes_target:
        # Whole time axis per block (block dim == full array dim is allowed
        # even when T is not a multiple of 128); DMA is fully contiguous.
        tT = T
    else:
        # Largest lane-dense (128-multiple) time tile that fits the budget.
        tT = (block_bytes_target // (F * itemsize)) // 128 * 128
        tT = int(max(128, min(tT, _round_up(T, 128))))
    grid_t = pl.cdiv(T, tT)

    # --- batch (b, c) rows per block only after tT is maxed -----------------
    # TODO(synk): F (the reduction axis) is taken whole per block; for very
    # large n_feats (F * 128 * itemsize > ~8 MiB) this would need an F-tiled
    # two-pass reduction to stay inside v7x's 64 MiB VMEM.
    bytes_per_row = F * tT * itemsize
    nBC = int(max(1, min(block_bytes_target // bytes_per_row, BC)))
    if grid_t == 1 and BC >= 2:
        # Keep at least 2 parallel blocks so both v7x TensorCores get work.
        nBC = min(nBC, -(-BC // 2))
    grid_bc = pl.cdiv(BC, nBC)

    x3 = x.reshape(BC, F, T)
    g = gamma.reshape(F, 1).astype(jnp.float32)
    b = beta.reshape(F, 1).astype(jnp.float32)

    # --- VMEM plan: 2 in + 2 out buffers, f32 temporaries, params, slack ----
    block_elems = nBC * F * tT
    block_bytes = block_elems * itemsize
    f32_block_bytes = block_elems * 4
    vmem_need = (4 * block_bytes          # double-buffered input + output
                 + 3 * f32_block_bytes    # x.astype(f32), x*x, y temporaries
                 + 4 * F * 4 * 2          # gamma/beta buffers
                 + (2 << 20))             # slack
    vmem_limit = int(min(max(vmem_need, 32 << 20), 56 << 20))

    grid = (grid_bc, grid_t)

    out = pl.pallas_call(
        _cnn_layernorm_kernel,
        out_shape=jax.ShapeDtypeStruct((BC, F, T), x.dtype),
        grid=grid,
        in_specs=[
            pl.BlockSpec((nBC, F, tT), lambda i, j: (i, 0, j)),
            pl.BlockSpec((F, 1), lambda i, j: (0, 0)),
            pl.BlockSpec((F, 1), lambda i, j: (0, 0)),
        ],
        out_specs=pl.BlockSpec((nBC, F, tT), lambda i, j: (i, 0, j)),
        compiler_params=pltpu.CompilerParams(
            dimension_semantics=("parallel", "parallel"),
            vmem_limit_bytes=vmem_limit,
        ),
        cost_estimate=pl.CostEstimate(
            flops=7 * BC * F * T,
            transcendentals=BC * T,
            bytes_accessed=2 * BC * F * T * itemsize,
        ),
    )(x3, g, b)

    return out.reshape(B, C, F, T)


def _reference(x, gamma, beta):
    # Pure-JAX reference mirroring the PyTorch module exactly:
    # transpose(2,3) -> LayerNorm(n_feats) -> transpose(2,3)
    xt = jnp.swapaxes(x, 2, 3).astype(jnp.float32)           # (B, C, T, F)
    mean = jnp.mean(xt, axis=-1, keepdims=True)
    var = jnp.mean((xt - mean) ** 2, axis=-1, keepdims=True)
    y = (xt - mean) / jnp.sqrt(var + EPS) * gamma + beta
    return jnp.swapaxes(y, 2, 3).astype(x.dtype)


if __name__ == "__main__":
    B, C, F, T = 2, 4, 16, 16
    key = jax.random.PRNGKey(0)
    x = jax.random.normal(key, (B, C, F, T), dtype=jnp.float32)

    # Deterministic, non-trivial LayerNorm parameters (shape (n_feats,) = (F,)).
    gamma = 1.0 + 0.01 * jnp.arange(F, dtype=jnp.float32)
    beta = 0.05 * jnp.arange(F, dtype=jnp.float32) - 0.1

    out = cnn_layer_norm(x, gamma, beta)
    out = jax.block_until_ready(out)

    ref = _reference(x, gamma, beta)
    assert out.shape == x.shape and out.dtype == x.dtype
    assert jnp.max(jnp.abs(out - ref)) < 1e-5, "mismatch vs reference"

    print("KERNEL_OK")
</pallas_src>

<mosaic_0001>
module attributes {stable_mosaic.version = 11 : i64} {
  func.func @_cnn_layernorm_kernel(%arg0: i32, %arg1: i32, %arg2: memref<4x16x16xf32, #tpu.memory_space<vmem>>, %arg3: memref<16x1xf32, #tpu.memory_space<vmem>>, %arg4: memref<16x1xf32, #tpu.memory_space<vmem>>, %arg5: memref<4x16x16xf32, #tpu.memory_space<vmem>>) attributes {dimension_semantics = [#tpu.dimension_semantics<parallel>, #tpu.dimension_semantics<parallel>], iteration_bounds = array<i64: 2, 1>, scalar_prefetch = 0 : i64, scratch_operands = 0 : i64, tpu.core_type = #tpu.core_type<tc>, window_params = [{transform_indices = @transform_0, window_bounds = array<i64: 4, 16, 16>}, {pipeline_mode = #tpu.pipeline_mode<synchronous>, transform_indices = @transform_1, window_bounds = array<i64: 16, 1>}, {pipeline_mode = #tpu.pipeline_mode<synchronous>, transform_indices = @transform_2, window_bounds = array<i64: 16, 1>}, {transform_indices = @transform_3, window_bounds = array<i64: 4, 16, 16>}]} {
    %c0 = arith.constant 0 : index
    %c0_0 = arith.constant 0 : index
    %c0_1 = arith.constant 0 : index
    %0 = vector.load %arg2[%c0, %c0_0, %c0_1] : memref<4x16x16xf32, #tpu.memory_space<vmem>>, vector<4x16x16xf32>
    %cst = arith.constant dense<0.000000e+00> : vector<4x16xf32>
    %1 = vector.multi_reduction <add>, %0, %cst [1] : vector<4x16x16xf32> to vector<4x16xf32>
    %2 = vector.shape_cast %1 : vector<4x16xf32> to vector<4x1x16xf32>
    %cst_2 = arith.constant 1.600000e+01 : f32
    %3 = vector.broadcast %cst_2 : f32 to vector<4x1x16xf32>
    %4 = arith.divf %2, %3 : vector<4x1x16xf32>
    %5 = arith.mulf %0, %0 : vector<4x16x16xf32>
    %cst_3 = arith.constant dense<0.000000e+00> : vector<4x16xf32>
    %6 = vector.multi_reduction <add>, %5, %cst_3 [1] : vector<4x16x16xf32> to vector<4x16xf32>
    %7 = vector.shape_cast %6 : vector<4x16xf32> to vector<4x1x16xf32>
    %cst_4 = arith.constant 1.600000e+01 : f32
    %8 = vector.broadcast %cst_4 : f32 to vector<4x1x16xf32>
    %9 = arith.divf %7, %8 : vector<4x1x16xf32>
    %10 = arith.mulf %4, %4 : vector<4x1x16xf32>
    %11 = arith.subf %9, %10 : vector<4x1x16xf32>
    %cst_5 = arith.constant 0.000000e+00 : f32
    %12 = vector.broadcast %cst_5 : f32 to vector<4x1x16xf32>
    %13 = arith.maximumf %11, %12 : vector<4x1x16xf32>
    %cst_6 = arith.constant 9.99999974E-6 : f32
    %14 = vector.broadcast %cst_6 : f32 to vector<4x1x16xf32>
    %15 = arith.addf %13, %14 : vector<4x1x16xf32>
    %16 = math.rsqrt %15 : vector<4x1x16xf32>
    %17 = vector.broadcast %4 : vector<4x1x16xf32> to vector<4x16x16xf32>
    %18 = arith.subf %0, %17 : vector<4x16x16xf32>
    %19 = vector.broadcast %16 : vector<4x1x16xf32> to vector<4x16x16xf32>
    %20 = arith.mulf %18, %19 : vector<4x16x16xf32>
    %c0_7 = arith.constant 0 : index
    %c0_8 = arith.constant 0 : index
    %21 = vector.load %arg3[%c0_7, %c0_8] : memref<16x1xf32, #tpu.memory_space<vmem>>, vector<16x1xf32>
    %22 = vector.shape_cast %21 : vector<16x1xf32> to vector<1x16x1xf32>
    %23 = vector.broadcast %22 : vector<1x16x1xf32> to vector<4x16x16xf32>
    %24 = arith.mulf %20, %23 : vector<4x16x16xf32>
    %c0_9 = arith.constant 0 : index
    %c0_10 = arith.constant 0 : index
    %25 = vector.load %arg4[%c0_9, %c0_10] : memref<16x1xf32, #tpu.memory_space<vmem>>, vector<16x1xf32>
    %26 = vector.shape_cast %25 : vector<16x1xf32> to vector<1x16x1xf32>
    %27 = vector.broadcast %26 : vector<1x16x1xf32> to vector<4x16x16xf32>
    %28 = arith.addf %24, %27 : vector<4x16x16xf32>
    %c0_11 = arith.constant 0 : index
    %c0_12 = arith.constant 0 : index
    %c0_13 = arith.constant 0 : index
    %29 = vector.load %arg5[%c0_11, %c0_12, %c0_13] : memref<4x16x16xf32, #tpu.memory_space<vmem>>, vector<4x16x16xf32>
    tpu.vector_store %arg5[%c0_11, %c0_12, %c0_13], %28 {strides = array<i32>} : memref<4x16x16xf32, #tpu.memory_space<vmem>>, vector<4x16x16xf32>,
    return
  }
  func.func @transform_0(%arg0: i32, %arg1: i32) -> (i32, i32, i32) {
    %c0_i32 = arith.constant 0 : i32
    %c0_i32_0 = arith.constant 0 : i32
    return %arg0, %c0_i32, %arg1 : i32, i32, i32
  }
  func.func @transform_1(%arg0: i32, %arg1: i32) -> (i32, i32) {
    %c0_i32 = arith.constant 0 : i32
    %c0_i32_0 = arith.constant 0 : i32
    %c0_i32_1 = arith.constant 0 : i32
    return %c0_i32, %c0_i32_0 : i32, i32
  }
  func.func @transform_2(%arg0: i32, %arg1: i32) -> (i32, i32) {
    %c0_i32 = arith.constant 0 : i32
    %c0_i32_0 = arith.constant 0 : i32
    %c0_i32_1 = arith.constant 0 : i32
    return %c0_i32, %c0_i32_0 : i32, i32
  }
  func.func @transform_3(%arg0: i32, %arg1: i32) -> (i32, i32, i32) {
    %c0_i32 = arith.constant 0 : i32
    %c0_i32_0 = arith.constant 0 : i32
    return %arg0, %c0_i32, %arg1 : i32, i32, i32
  }
}

</mosaic_0001>

<bundles_post_ra>
// kernel: tpu_custom_call.1
= control target key start
LH: loop header
LB: loop body
LE: loop exit
PB: predicated region body
PF: predicated region fallthrough
CT: control target
= control target key end

     0   :  { %8 = vsyncpa [#allocation3], 0  ;;  %s1011_s0 = inlined_call_operand.hbm [shape: f32[8,16,16], index: 0, kind: input, shape index: {}]   ;;  %s1012_s1 = inlined_call_operand.vmem [shape: f32[16,1], index: 1, kind: input, shape index: {}]   ;;  %s1013_s2 = inlined_call_operand.vmem [shape: f32[16,1], index: 2, kind: input, shape index: {}]   ;;  %s1014_s3 = inlined_call_operand.hbm [shape: f32[8,16,16], index: 3, kind: output, shape index: {}]  }
   0x1   :  { %10 = vsyncpa [#allocation3 + $0x1], 0 }
   0x2   :  { %11 = vsyncpa [#allocation4], 0 }
   0x3   :  { %13 = vsyncpa [#allocation4 + $0x1], 0  ;;  %s779_s12 = smov 0   ;;  %s781_s13 = smov 0  }
   0x4   :  { %s783_s14 = smov 0   ;;  %s785_s15 = smov 0  }
   0x5   :  { %s787_s16 = smov 0   ;;  %s789_s17 = smov 0  }
   0x6 LB: > { %s538_s18 = sadd.s32 4294967295, %s751_s17   ;;  %s539_s19 = sadd.s32 4294967294, %s751_s17   ;;  %s751_s17 = sphi %s789_s17, %s19_s17   ;;  %s747_s16 = sphi %s787_s16, %s1023_s16   ;;  %s743_s15 = sphi %s785_s15, %s1022_s15   ;;  %s739_s14 = sphi %s783_s14, %s1021_s14   ;;  %s735_s13 = sphi %s781_s13, %s1020_s13   ;;  %s731_s12 = sphi %s779_s12, %s1019_s12  }
   0x7   : > { %s31_s20 = sadd.s32 1, %s747_s16  ;;  %s40_s21 = sadd.s32 1, %s739_s14 }
   0x8   : > { %p33_p0 = scmp.ge.s32.totalorder %s31_s20, 2  ;;  %p47_p1 = scmp.ne.s32.totalorder %s739_s14, %s735_s13 }
   0x9   : > { %p48_p2 = scmp.eq.s32.totalorder %s751_s17, 0  ;;  %p53_p3 = scmp.ne.s32.totalorder %s735_s13, %s731_s12 }
   0xa   : > { %s1025_s20 = smov (%p33_p0, %s31_s20), 0  ;;  %p54_p5 = scmp.eq.s32.totalorder %s538_s18, 0 }
   0xb   : > { %p820_p4 = por %p48_p2, %p47_p1  ;;  %s35_s23 = ssub.s32 %s747_s16, %s1025_s20 }
   0xc   : > { %p121_p6 = scmp.eq.s32.totalorder %s538_s18, 1  ;;  %p38_p7 = scmp.eq.s32.totalorder %s35_s23, 0 }
   0xd   : > { %p826_p8 = por %p54_p5, %p53_p3  ;;  %p127_p10 = scmp.eq.s32.totalorder %s539_s19, 1 }
   0xe   : > { %p830_p9 = por %p121_p6, %p47_p1  ;;  %p541_p12 = scmp.ge.s32.totalorder %s751_s17, 2 }
   0xf   : > { %s835_s26 = scalar_select %p38_p7, %s739_s14, %s40_s21  }
  0x10   : > { %p837_p11 = por %p127_p10, %p53_p3  ;;  %p571_p13 = scmp.lt.s32.totalorder %s751_s17, 2 }
  0x11   : > { %s153_s28 = sand.u32 1, %s739_s14   ;;  %s556_s30 = sshll.u32 %s747_s16, 6 }
  0x12   : > { %s542_s29 = sshll.u32 %s153_s28, 6  ;;  %s164_s6 = scalar_lea.hbm %s1011_s0, %s556_s30 }
  0x13   : > { %s157_s7 = scalar_lea.vmem [#allocation2], %s542_s29  ;;  %s165_s9 = sshll.u32 %s164_s6, 4  ;;  %s166_s9 = int_to_ptr.hbm [resolvable:$true] %s165_s9 }
  0x14   : > { %s167_s8 = sshll.u32 %s157_s7, 4  ;;  %p564_p0 = pnand %p571_p13, %p820_p4  ;;  %s168_s8 = int_to_ptr.vmem [resolvable:$true] %s167_s8 }
  0x15   : > { %p546_p1 = scmp.ge.s32.totalorder %s751_s17, 1  ;;  %s154_s10 = scalar_lea.sflag [#allocation3], %s153_s28 }
  0x16   : > { %s753_s11 = smov 128   ;;  %s754_s18 = smov 8  }
  0x17   : > { %566 = dma.hbm_to_vmem [thread:$0]  (!%p564_p0), %s166_s9, 1024, %s168_s8, %s154_s10, %s753_s11, %s753_s11, %s754_s18  }
  0x18   : > { %p175_p2 = scmp.lt.s32.totalorder %s751_s17, 3 }
  0x1a   : > { %p176_p3 = pnand %p546_p1, %p175_p2 }
  0x1b   : > { %s853_s19 = sand.u32 (!%p176_p3), 1, %s735_s13  }
  0x1c   : > { %179 = sbr.rel (%p176_p3) target bundleno = 170 (0xaa), region = 32  ;;  %s547_s21 = sshll.u32 (!%p176_p3), %s853_s19, 6 }
  0x1d   : > { %s182_s23 = scalar_lea.sflag (!%p176_p3), [#allocation3], %s853_s19  ;;  %s185_s22 = scalar_lea.vmem (!%p176_p3), [#allocation2], %s547_s21 }
  0x21   : > { %722 = dma.done.wait (%p826_p8), %s182_s23, 1024  }
  0x22   : > { %724 = vsyncadd (%p826_p8), %s182_s23, 4294966272  ;;  %v755_v0 = vmov 0   ;;  %v407_v1 = vld [vmem:[%s1013_s2] sm:$0xff]  ;;  %v408_v3 = vld [vmem:[%s1013_s2 + $0x8] sm:$0xff]  ;;  %vm219_vm0 = vcmask 130048   ;;  %v756_v5 = vmov 16.0  }
  0x23   : > { %628 = vset.pattern.permute.xlu1 %v755_v0  ;;  %627 = vset.pattern.permute.xlu0 %v755_v0  ;;  %v387_v2 = vld [vmem:[%s1012_s1] sm:$0xff]  ;;  %v388_v4 = vld [vmem:[%s1012_s1 + $0x8] sm:$0xff]  ;;  %629 = vrcp.f32 %v756_v5  ;;  %v879_v8 = vld [vmem:[%s185_s22 + $0x10] sm:$0xff]  ;;  %s558_s8 = sshll.u32 %s743_s15, 6  ;;  %s208_s9 = scalar_lea.vmem [#allocation5], %s547_s21 }
  0x24   : > { %411 = vperm.xlu1 %628, %v407_v1   ;;  %391 = vperm.xlu0 %627, %v387_v2   ;;  %v875_v6 = vld [vmem:[%s185_s22] sm:$0xff]  ;;  %v877_v7 = vld [vmem:[%s185_s22 + $0x8] sm:$0xff]  ;;  %v881_v9 = vld [vmem:[%s185_s22 + $0x18] sm:$0xff]  ;;  %v229_v14 = vsel %vm219_vm0, %v879_v8, 0.0  ;;  %v269_v34 = vmul.f32 %v879_v8, %v879_v8  ;;  %s449_s18 = scalar_lea.hbm %s1014_s3, %s558_s8  ;;  %s450_s15 = sshll.u32 %s208_s9, 4  ;;  %s451_s15 = int_to_ptr.vmem [resolvable:$true] %s450_s15 }
  0x25   : > { %v883_v10 = vld [vmem:[%s185_s22 + $0x20] sm:$0xff]  ;;  %v885_v11 = vld [vmem:[%s185_s22 + $0x28] sm:$0xff]  ;;  %v220_v12 = vsel %vm219_vm0, %v875_v6, 0.0  ;;  %v221_v13 = vsel %vm219_vm0, %v877_v7, 0.0  ;;  %v893_v15 = vld [vmem:[%s185_s22 + $0x30] sm:$0xff]  ;;  %v230_v18 = vsel %vm219_vm0, %v881_v9, 0.0  ;;  %v267_v27 = vmul.f32 %v875_v6, %v875_v6 }
  0x26   : > { %v895_v16 = vld [vmem:[%s185_s22 + $0x38] sm:$0xff]  ;;  %v222_v17 = vadd.f32 %v221_v13, %v220_v12  ;;  %v238_v19 = vsel %vm219_vm0, %v883_v10, 0.0  ;;  %v239_v20 = vsel %vm219_vm0, %v885_v11, 0.0  ;;  %v231_v21 = vadd.f32 %v230_v18, %v229_v14  ;;  %s452_s21 = sshll.u32 %s449_s18, 4  ;;  %s436_s23 = scalar_lea.sflag [#allocation4], %s853_s19  ;;  %s453_s21 = int_to_ptr.hbm [resolvable:$true] %s452_s21 }
  0x27   : > { %v240_v22 = vadd.f32 %v239_v20, %v238_v19  ;;  %v247_v23 = vsel %vm219_vm0, %v893_v15, 0.0  ;;  %v248_v24 = vsel %vm219_vm0, %v895_v16, 0.0  ;;  %v268_v28 = vmul.f32 %v877_v7, %v877_v7  ;;  %s683_s22 = sshra.s32 %s453_s21, 4  ;;  %s689_s4 = scalar_lea.hbm %s1014_s3, 128  ;;  %s684_s22 = int_to_ptr.hbm [resolvable:$true] %s683_s22 }
  0x28   : > { %v223_v25 = vrot.slane %v222_v17, 4  ;;  %v249_v26 = vadd.f32 %v248_v24, %v247_v23  ;;  %v232_v29 = vrot.slane %v231_v21, 4  ;;  %v270_v35 = vmul.f32 %v881_v9, %v881_v9  ;;  %s685_s28 = scalar_lea.hbm %s684_s22, 64  ;;  %p690_p7 = scmp.lt.s32.totalorder %s684_s22, %s1014_s3 }
  0x29   : > { %v241_v30 = vrot.slane %v240_v22, 4  ;;  %v630_v31 = vpop.eup %629  ;;  %v271_v39 = vmul.f32 %v883_v10, %v883_v10  ;;  %v275_v42 = vsel %vm219_vm0, %v267_v27, 0.0  ;;  %v276_v43 = vsel %vm219_vm0, %v268_v28, 0.0  ;;  %p686_p4 = scmp.ne.s32.totalorder %s684_s22, %s685_s28  ;;  %p691_p8 = scmp.lt.s32.totalorder %s689_s4, %s685_s28 }
  0x2a   : > { %v224_v32 = vadd.f32 %v223_v25, %v222_v17  ;;  %v250_v33 = vrot.slane %v249_v26, 4  ;;  %v257_v36 = vmul.f32 16.0, %v630_v31  ;;  %v233_v37 = vadd.f32 %v232_v29, %v231_v21 }
  0x2b   : > { %v242_v38 = vadd.f32 %v241_v30, %v240_v22  ;;  %v277_v47 = vadd.f32 %v276_v43, %v275_v42  ;;  %v284_v50 = vsel %vm219_vm0, %v269_v34, 0.0  ;;  %v285_v51 = vsel %vm219_vm0, %v270_v35, 0.0  ;;  %p687_p5 = pnand %p686_p4, %p830_p9  ;;  %p692_p10 = por %p691_p8, %p690_p7 }
  0x2c   : > { %416 = vperm.xlu1 %628, %v408_v3   ;;  %396 = vperm.xlu0 %627, %v388_v4   ;;  %v225_v40 = vrot.slane %v224_v32, 2  ;;  %v251_v41 = vadd.f32 %v250_v33, %v249_v26  ;;  %v258_v44 = vsub.f32 1.0, %v257_v36  ;;  %v234_v45 = vrot.slane %v233_v37, 2 }
  0x2d   : > { %v243_v46 = vrot.slane %v242_v38, 2  ;;  %v272_v54 = vmul.f32 %v885_v11, %v885_v11  ;;  %v278_v55 = vrot.slane %v277_v47, 4  ;;  %v273_v57 = vmul.f32 %v893_v15, %v893_v15  ;;  %p688_p6 = pneg %p687_p5 }
  0x2e   : > { %v226_v48 = vadd.f32 %v225_v40, %v224_v32  ;;  %v252_v49 = vrot.slane %v251_v41, 2  ;;  %v259_v52 = vmul.f32 %v630_v31, %v258_v44  ;;  %v235_v53 = vadd.f32 %v234_v45, %v233_v37 }
  0x2f   : > { %v274_v58 = vmul.f32 %v895_v16, %v895_v16  ;;  %v286_v59 = vadd.f32 %v285_v51, %v284_v50  ;;  %v244_v62 = vadd.f32 %v243_v46, %v242_v38  ;;  %v279_v63 = vadd.f32 %v278_v55, %v277_v47  ;;  %p693_p13 = pnand %p692_p10, %p688_p6 }
  0x30   : > { %v227_v56 = vrot.slane %v226_v48, 1  ;;  %v260_v60 = vadd.f32 %v630_v31, %v259_v52  ;;  %v236_v61 = vrot.slane %v235_v53, 1  ;;  %vm261_vm1 = vweird.f32 %v630_v31 }
  0x31   : > { %v253_v0 = vadd.f32 %v252_v49, %v251_v41  ;;  %v287_v1 = vrot.slane %v286_v59, 4  ;;  %v293_v2 = vsel %vm219_vm0, %v271_v39, 0.0  ;;  %v280_v4 = vrot.slane %v279_v63, 2 }
  0x32   : > { %v228_v3 = vadd.f32 %v227_v56, %v226_v48  ;;  %v262_v5 = vsel %vm261_vm1, %v630_v31, %v260_v60  ;;  %v237_v12 = vadd.f32 %v236_v61, %v235_v53  ;;  %v294_v14 = vsel %vm219_vm0, %v272_v54, 0.0 }
  0x33   : > { %v288_v13 = vadd.f32 %v287_v1, %v286_v59  ;;  %v245_v17 = vrot.slane %v244_v62, 1  ;;  %v281_v18 = vadd.f32 %v280_v4, %v279_v63  ;;  %v295_v19 = vadd.f32 %v294_v14, %v293_v2 }
  0x34   : > { %v254_v20 = vrot.slane %v253_v0, 1  ;;  %v302_v22 = vsel %vm219_vm0, %v273_v57, 0.0  ;;  %v303_v23 = vsel %vm219_vm0, %v274_v58, 0.0  ;;  %v931_v24 = vmul.f32 %v262_v5, %v228_v3 }
  0x35   : > { %v289_v21 = vrot.slane %v288_v13, 2  ;;  %v282_v25 = vrot.slane %v281_v18, 1  ;;  %v296_v26 = vrot.slane %v295_v19, 4  ;;  %v304_v27 = vadd.f32 %v303_v23, %v302_v22 }
  0x36   : > { %v933_v28 = vmul.f32 %v262_v5, %v237_v12  ;;  %v246_v30 = vadd.f32 %v245_v17, %v244_v62  ;;  %v255_v34 = vadd.f32 %v254_v20, %v253_v0  ;;  %v315_v39 = vmul.f32 %v931_v24, %v931_v24 }
  0x37   : > { %v290_v29 = vadd.f32 %v289_v21, %v288_v13  ;;  %v283_v31 = vadd.f32 %v282_v25, %v281_v18  ;;  %v297_v32 = vadd.f32 %v296_v26, %v295_v19  ;;  %v305_v33 = vrot.slane %v304_v27, 4 }
  0x38   : > { %v316_v41 = vmul.f32 %v933_v28, %v933_v28  ;;  %v939_v42 = vmul.f32 %v262_v5, %v246_v30  ;;  %v941_v46 = vmul.f32 %v262_v5, %v255_v34 }
  0x39   : > { %v291_v35 = vrot.slane %v290_v29, 1  ;;  %v298_v36 = vrot.slane %v297_v32, 2  ;;  %v306_v37 = vadd.f32 %v305_v33, %v304_v27  ;;  %v311_v38 = vmul.f32 %v283_v31, %v262_v5 }
  0x3a   : > { %v317_v53 = vmul.f32 %v939_v42, %v939_v42  ;;  %v318_v56 = vmul.f32 %v941_v46, %v941_v46 }
  0x3b   : > { %v292_v40 = vadd.f32 %v291_v35, %v290_v29  ;;  %v299_v43 = vadd.f32 %v298_v36, %v297_v32  ;;  %v307_v44 = vrot.slane %v306_v37, 2  ;;  %v319_v49 = vsub.f32 %v311_v38, %v315_v39 }
  0x3c   : > { %v371_v38 = vsub.f32 %v875_v6, %v931_v24  ;;  %v373_v39 = vsub.f32 %v879_v8, %v933_v28  ;;  %v372_v8 = vsub.f32 %v877_v7, %v931_v24 }
  0x3d   : > { %v312_v45 = vmul.f32 %v292_v40, %v262_v5  ;;  %v300_v47 = vrot.slane %v299_v43, 1  ;;  %v308_v48 = vadd.f32 %v307_v44, %v306_v37  ;;  %v323_v57 = vmax.f32 %v319_v49, 0.0 }
  0x3e   : > { %v375_v40 = vsub.f32 %v883_v10, %v939_v42  ;;  %v374_v10 = vsub.f32 %v881_v9, %v933_v28 }
  0x3f   : > { %v320_v50 = vsub.f32 %v312_v45, %v316_v41  ;;  %v301_v51 = vadd.f32 %v300_v47, %v299_v43  ;;  %v309_v52 = vrot.slane %v308_v48, 1  ;;  %v327_v63 = vadd.f32 1e-05, %v323_v57 }
  0x40   : > { %v377_v41 = vsub.f32 %v893_v15, %v941_v46  ;;  %v376_v15 = vsub.f32 %v885_v11, %v939_v42 }
  0x41   : > { %v310_v54 = vadd.f32 %v309_v52, %v308_v48  ;;  %v313_v55 = vmul.f32 %v301_v51, %v262_v5  ;;  %v324_v58 = vmax.f32 %v320_v50, 0.0  ;;  %631 = vrsqrt.f32 %v327_v63 }
  0x42   : > { %vm337_vm2 = vweird.f32 %v327_v63 }
  0x43   : > { %v314_v59 = vmul.f32 %v310_v54, %v262_v5  ;;  %v321_v60 = vsub.f32 %v313_v55, %v317_v53  ;;  %v328_v0 = vadd.f32 1e-05, %v324_v58  ;;  %v378_v53 = vsub.f32 %v895_v16, %v941_v46 }
  0x45   : > { %v322_v61 = vsub.f32 %v314_v59, %v318_v56  ;;  %v325_v62 = vmax.f32 %v321_v60, 0.0  ;;  %633 = vrsqrt.f32 %v328_v0  ;;  %vm347_vm4 = vweird.f32 %v328_v0 }
  0x47   : > { %v326_v1 = vmax.f32 %v322_v61, 0.0  ;;  %v329_v2 = vadd.f32 1e-05, %v325_v62  ;;  %v632_v4 = vpop.eup %631 }
  0x48   : > { %v332_v17 = vmul.f32 %v632_v4, %v327_v63  ;;  %vm338_vm3 = vweird.f32 %v632_v4 }
  0x49   : > { %v330_v3 = vadd.f32 1e-05, %v326_v1  ;;  %635 = vrsqrt.f32 %v329_v2  ;;  %vm357_vm6 = vweird.f32 %v329_v2  ;;  %vm339_vm8 = vmor %vm337_vm2, %vm338_vm3 }
  0x4a   : > { %v333_v20 = vmul.f32 %v632_v4, %v332_v17 }
  0x4b   : > { %637 = vrsqrt.f32 %v330_v3  ;;  %v634_v12 = vpop.eup %633  ;;  %vm367_vm9 = vweird.f32 %v330_v3 }
  0x4c   : > { %v342_v18 = vmul.f32 %v634_v12, %v328_v0  ;;  %v334_v25 = vmul.f32 0.5, %v333_v20  ;;  %vm348_vm5 = vweird.f32 %v634_v12 }
  0x4d   : > { %vm349_vm11 = vmor %vm347_vm4, %vm348_vm5 }
  0x4e   : > { %v343_v21 = vmul.f32 %v634_v12, %v342_v18  ;;  %v335_v30 = vsub.f32 1.5, %v334_v25 }
  0x4f   : > { %v636_v13 = vpop.eup %635 }
  0x50   : > { %v352_v19 = vmul.f32 %v636_v13, %v329_v2  ;;  %v344_v26 = vmul.f32 0.5, %v343_v21  ;;  %vm358_vm7 = vweird.f32 %v636_v13  ;;  %v336_v34 = vmul.f32 %v632_v4, %v335_v30 }
  0x51   : > { %v638_v14 = vpop.eup %637  ;;  %vm359_vm12 = vmor %vm357_vm6, %vm358_vm7 }
  0x52   : > { %v362_v5 = vmul.f32 %v638_v14, %v330_v3  ;;  %v353_v22 = vmul.f32 %v636_v13, %v352_v19  ;;  %v345_v31 = vsub.f32 1.5, %v344_v26  ;;  %vm368_vm10 = vweird.f32 %v638_v14 }
  0x53   : > { %vm369_vm13 = vmor %vm367_vm9, %vm368_vm10  ;;  %v340_v43 = vsel %vm339_vm8, %v632_v4, %v336_v34 }
  0x54   : > { %v363_v23 = vmul.f32 %v638_v14, %v362_v5  ;;  %v354_v27 = vmul.f32 0.5, %v353_v22  ;;  %v346_v35 = vmul.f32 %v634_v12, %v345_v31  ;;  %v379_v48 = vmul.f32 %v371_v38, %v340_v43 }
  0x55   : > { %v380_v7 = vmul.f32 %v372_v8, %v340_v43 }
  0x56   : > { %v364_v29 = vmul.f32 0.5, %v363_v23  ;;  %v355_v32 = vsub.f32 1.5, %v354_v27  ;;  %v350_v44 = vsel %vm349_vm11, %v634_v12, %v346_v35 }
  0x57   : > { %v381_v49 = vmul.f32 %v373_v39, %v350_v44  ;;  %v382_v9 = vmul.f32 %v374_v10, %v350_v44 }
  0x58   : > { %v365_v33 = vsub.f32 1.5, %v364_v29  ;;  %v356_v36 = vmul.f32 %v636_v13, %v355_v32 }
  0x5a   : > { %v366_v37 = vmul.f32 %v638_v14, %v365_v33  ;;  %v360_v45 = vsel %vm359_vm12, %v636_v13, %v356_v36 }
  0x5b   : > { %v383_v50 = vmul.f32 %v375_v40, %v360_v45  ;;  %v384_v24 = vmul.f32 %v376_v15, %v360_v45 }
  0x5c   : > { %v370_v47 = vsel %vm369_vm13, %v638_v14, %v366_v37 }
  0x5d   : > { %v385_v51 = vmul.f32 %v377_v41, %v370_v47  ;;  %v386_v11 = vmul.f32 %v378_v53, %v370_v47 }
  0x96   : > { %v412_v6 = vpop.permute.xlu1 %411  ;;  %v392_v52 = vpop.permute.xlu0 %391 }
  0x97   : > { %v399_v54 = vmul.f32 %v392_v52, %v379_v48  ;;  %v401_v55 = vmul.f32 %v392_v52, %v381_v49  ;;  %v403_v56 = vmul.f32 %v392_v52, %v383_v50  ;;  %v405_v57 = vmul.f32 %v392_v52, %v385_v51 }
  0x99   : > { %v419_v58 = vadd.f32 %v412_v6, %v399_v54  ;;  %v421_v59 = vadd.f32 %v412_v6, %v401_v55  ;;  %v423_v60 = vadd.f32 %v412_v6, %v403_v56  ;;  %v425_v61 = vadd.f32 %v412_v6, %v405_v57 }
  0x9b   : > { %427 = vst.msk [vmem:[%s208_s9] sm:$0xff] %vm219_vm0, %v419_v58 }
  0x9c   : > { %429 = vst.msk [vmem:[%s208_s9 + $0x10] sm:$0xff] %vm219_vm0, %v421_v59 }
  0x9d   : > { %431 = vst.msk [vmem:[%s208_s9 + $0x20] sm:$0xff] %vm219_vm0, %v423_v60 }
  0x9e   : > { %433 = vst.msk [vmem:[%s208_s9 + $0x30] sm:$0xff] %vm219_vm0, %v425_v61  ;;  %v397_v16 = vpop.permute.xlu0 %396  ;;  %v417_v63 = vpop.permute.xlu1 %416 }
  0x9f   : > { %v400_v28 = vmul.f32 %v397_v16, %v380_v7  ;;  %v402_v42 = vmul.f32 %v397_v16, %v382_v9  ;;  %v404_v46 = vmul.f32 %v397_v16, %v384_v24  ;;  %v406_v62 = vmul.f32 %v397_v16, %v386_v11 }
  0xa1   : > { %v420_v0 = vadd.f32 %v417_v63, %v400_v28  ;;  %v422_v1 = vadd.f32 %v417_v63, %v402_v42  ;;  %v424_v2 = vadd.f32 %v417_v63, %v404_v46  ;;  %v426_v3 = vadd.f32 %v417_v63, %v406_v62 }
  0xa3   : > { %428 = vst.msk [vmem:[%s208_s9 + $0x8] sm:$0xff] %vm219_vm0, %v420_v0 }
  0xa4   : > { %430 = vst.msk [vmem:[%s208_s9 + $0x18] sm:$0xff] %vm219_vm0, %v422_v1 }
  0xa5   : > { %432 = vst.msk [vmem:[%s208_s9 + $0x28] sm:$0xff] %vm219_vm0, %v424_v2 }
  0xa6   : > { %434 = vst.msk [vmem:[%s208_s9 + $0x38] sm:$0xff] %vm219_vm0, %v426_v3 }
  0xa7   : > { %696 = shalt.err (!%p693_p13)
}
  0xa8   : > { %s757_s19 = smov 128   ;;  %s758_s7 = smov 8  }
  0xa9   : > { %561 = dma.vmem_to_hbm [thread:$0]  (%p830_p9), %s451_s15, 1024, %s453_s21, %s436_s23, %s757_s19, %s757_s19, %s758_s7  }
  0xaa PF: > { %s467_s24 = sand.u32 1, %s731_s12   ;;  %p568_p0 = pnand %p541_p12, %p837_p11 }
  0xab   : > { %s468_s8 = scalar_lea.sflag [#allocation4], %s467_s24 }
  0xac   : > { %p569_p1 = pneg %p568_p0 }
  0xae   : > { %726 = dma.done.wait (%p569_p1), %s468_s8, 1024  }
  0xaf   : > { %728 = vsyncadd (%p569_p1), %s468_s8, 4294966272  ;;  %s19_s17 = sadd.s32 1, %s751_s17   ;;  %s1019_s12 = smov %s735_s13 }
  0xb0   : > { %p16_p2 = scmp.ge.s32.totalorder %s19_s17, 4   ;;  %s1020_s13 = smov %s739_s14 }
  0xb1   : > { %s1021_s14 = smov %s835_s26  ;;  %s1022_s15 = smov %s747_s16 }
  0xb2   : > { %s1023_s16 = smov %s1025_s20  ;;  %18 = sbr.rel (!%p16_p2) target bundleno = 6 (0x6), region = 77 }
  0xb7   :  { %474 = vsyncpa [#allocation3], 1 }
  0xb8   :  { %476 = vsyncpa [#allocation3 + $0x1], 1 }
  0xb9   :  { %477 = vsyncpa [#allocation4], 1 }
  0xba   :  { %479 = vsyncpa [#allocation4 + $0x1], 1 }

</bundles_post_ra>
